<compile_context>
chip_gen: v5e
topology: v5e:2x2
jax: 0.10.0
libtpu: 0.0.40
codegen_flags: <defaults>
</compile_context>

<pallas_src>
import functools

import jax
import jax.numpy as jnp
from jax.experimental import pallas as pl
from jax.experimental.pallas import tpu as pltpu

LANE = 128
NEG_BIG = -1e30  # effectively -inf for padded logit lanes


def _round_up(n, m):
    return ((n + m - 1) // m) * m


# ----------------------------------------------------------------------------
# Kernel: one RNN step per grid iteration t.
#   x_ref   [B, In]   (slice t of the [T, B, In] input, leading dim squeezed)
#   h0_ref  [B, Hp]   initial hidden (zero-padded), read only at t == 0
#   w_x_ref [In, Hp]  W_i2h^T (zero-padded)         -- VMEM-resident
#   w_h_ref [Hp, Hp]  W_h2h^T (zero-padded)         -- VMEM-resident
#   b_h_ref [1, Hp]   b_i2h + b_h2h (zero-padded)   -- VMEM-resident
#   w_o_ref [Hp, Op]  W_h2o^T (zero-padded)         -- VMEM-resident
#   b_o_ref [1, Op]   b_h2o (padded lanes = -1e30)  -- VMEM-resident
# Outputs:
#   out_ref [B, Op]   log-softmax for step t (slice t of [T, B, Op])
#   hid_ref [B, Hp]   hidden state; constant index_map -> resident across the
#                     grid, so it doubles as the recurrent carry.
# ----------------------------------------------------------------------------
def rnn_seq_kernel(x_ref, h0_ref, w_x_ref, w_h_ref, b_h_ref, w_o_ref, b_o_ref,
                   out_ref, hid_ref):
    t = pl.program_id(0)

    @pl.when(t == 0)
    def _():
        hid_ref[...] = h0_ref[...]

    h = hid_ref[...]

    # hidden = tanh(x @ W_i2h^T + h @ W_h2h^T + (b_i2h + b_h2h))
    pre = (jnp.dot(x_ref[...], w_x_ref[...], preferred_element_type=jnp.float32)
           + jnp.dot(h, w_h_ref[...], preferred_element_type=jnp.float32)
           + b_h_ref[...])
    hidden = jnp.tanh(pre)                      # padded lanes: tanh(0) == 0

    # logits = hidden @ W_h2o^T + b_h2o   (padded lanes biased to -1e30)
    logits = (jnp.dot(hidden, w_o_ref[...], preferred_element_type=jnp.float32)
              + b_o_ref[...])

    # numerically stable log_softmax over the lane-dense feature axis.
    m = jnp.max(logits, axis=-1, keepdims=True)
    shifted = logits - m
    lse = jnp.log(jnp.sum(jnp.exp(shifted), axis=-1, keepdims=True))

    out_ref[...] = (shifted - lse).astype(out_ref.dtype)
    hid_ref[...] = hidden.astype(hid_ref.dtype)   # carry to step t+1


# ----------------------------------------------------------------------------
# One-time parameter re-layout (transpose + lane padding).  Arrays only.
# ----------------------------------------------------------------------------
def prepare_params(params, input_size, hidden_size, output_size):
    Hp = _round_up(hidden_size, LANE)
    Op = _round_up(output_size, LANE)
    f32 = jnp.float32

    w_x = jnp.zeros((input_size, Hp), f32)
    w_x = w_x.at[:, :hidden_size].set(params["w_i2h"].T)

    w_h = jnp.zeros((Hp, Hp), f32)
    w_h = w_h.at[:hidden_size, :hidden_size].set(params["w_h2h"].T)

    b_h = jnp.zeros((1, Hp), f32)
    b_h = b_h.at[0, :hidden_size].set(params["b_i2h"] + params["b_h2h"])

    w_o = jnp.zeros((Hp, Op), f32)
    w_o = w_o.at[:hidden_size, :output_size].set(params["w_h2o"].T)

    b_o = jnp.full((1, Op), NEG_BIG, f32)
    b_o = b_o.at[0, :output_size].set(params["b_h2o"])

    return dict(w_x=w_x, w_h=w_h, b_h=b_h, w_o=w_o, b_o=b_o)


# ----------------------------------------------------------------------------
# Sequence forward: x_seq [T, B, In], h0 [B, H]
#   -> (log_softmax outputs [T, B, Out], final hidden [B, H])
# One pallas_call for the whole sequence; weights stay VMEM-resident.
# ----------------------------------------------------------------------------
@functools.partial(jax.jit, static_argnames=("hidden_size", "output_size"))
def rnn_forward_sequence(x_seq, h0, weights, *, hidden_size, output_size):
    T, B, In = x_seq.shape
    Hp = weights["w_h"].shape[0]
    Op = weights["w_o"].shape[1]

    h0_pad = jnp.zeros((B, Hp), x_seq.dtype).at[:, :hidden_size].set(h0)

    const2 = lambda shape: pl.BlockSpec(shape, lambda t: (0, 0))

    out_seq_p, hid_p = pl.pallas_call(
        rnn_seq_kernel,
        grid=(T,),
        in_specs=[
            pl.BlockSpec((None, B, In), lambda t: (t, 0, 0)),  # x_t, streamed
            const2((B, Hp)),                                   # h0, resident
            const2((In, Hp)),                                  # W_i2h^T, resident
            const2((Hp, Hp)),                                  # W_h2h^T, resident
            const2((1, Hp)),                                   # b_h, resident
            const2((Hp, Op)),                                  # W_h2o^T, resident
            const2((1, Op)),                                   # b_o, resident
        ],
        out_specs=(
            pl.BlockSpec((None, B, Op), lambda t: (t, 0, 0)),  # per-step output
            const2((B, Hp)),                                   # hidden carry
        ),
        out_shape=(jax.ShapeDtypeStruct((T, B, Op), x_seq.dtype),
                   jax.ShapeDtypeStruct((B, Hp), x_seq.dtype)),
        compiler_params=pltpu.CompilerParams(
            dimension_semantics=("arbitrary",)),  # time carries state
    )(x_seq, h0_pad, weights["w_x"], weights["w_h"], weights["b_h"],
      weights["w_o"], weights["b_o"])

    # De-pad once per sequence (not per step).
    # TODO(synk): on v7x, shard independent sequences / the batch over the two
    # TensorCores via an additional leading "parallel" grid axis.
    return out_seq_p[..., :output_size], hid_p[:, :hidden_size]


# Single-step forward matching the PyTorch module signature: (x, h) -> (out, h')
def rnn_forward(x, h, weights, *, hidden_size, output_size):
    out_seq, hid = rnn_forward_sequence(
        x[None], h, weights, hidden_size=hidden_size, output_size=output_size)
    return out_seq[0], hid


# ----------------------------------------------------------------------------
# PyTorch-style init and pure-JAX reference for verification.
# ----------------------------------------------------------------------------
def init_params(key, input_size, hidden_size, output_size):
    ks = jax.random.split(key, 6)

    def linear(kw, kb, fan_in, fan_out):
        bound = 1.0 / jnp.sqrt(fan_in)
        w = jax.random.uniform(kw, (fan_out, fan_in), jnp.float32, -bound, bound)
        b = jax.random.uniform(kb, (fan_out,), jnp.float32, -bound, bound)
        return w, b

    w_i2h, b_i2h = linear(ks[0], ks[1], input_size, hidden_size)
    w_h2h, b_h2h = linear(ks[2], ks[3], hidden_size, hidden_size)
    w_h2o, b_h2o = linear(ks[4], ks[5], hidden_size, output_size)
    return dict(w_i2h=w_i2h, b_i2h=b_i2h,
                w_h2h=w_h2h, b_h2h=b_h2h,
                w_h2o=w_h2o, b_h2o=b_h2o)


def rnn_reference(x, h, params):
    hi = jnp.dot(x, params["w_i2h"].T, precision=jax.lax.Precision.HIGHEST)
    hh = jnp.dot(h, params["w_h2h"].T, precision=jax.lax.Precision.HIGHEST)
    hidden = jnp.tanh(hi + params["b_i2h"] + hh + params["b_h2h"])
    logits = jnp.dot(hidden, params["w_h2o"].T,
                     precision=jax.lax.Precision.HIGHEST) + params["b_h2o"]
    out = jax.nn.log_softmax(logits, axis=1)
    return out, hidden


if __name__ == "__main__":
    input_size, hidden_size, output_size = 16, 32, 10
    batch, seq_len = 8, 8

    key = jax.random.PRNGKey(0)
    kp, kx = jax.random.split(key, 2)
    params = init_params(kp, input_size, hidden_size, output_size)
    weights = prepare_params(params, input_size, hidden_size, output_size)

    x_seq = jax.random.normal(kx, (seq_len, batch, input_size), jnp.float32)
    h0 = jnp.zeros((batch, hidden_size), jnp.float32)   # init_zero_hidden

    # --- multi-step path: whole sequence in one pallas_call -----------------
    out_seq, hid = rnn_forward_sequence(
        x_seq, h0, weights, hidden_size=hidden_size, output_size=output_size)
    out_seq = jax.block_until_ready(out_seq)
    hid = jax.block_until_ready(hid)

    ref_h = h0
    ref_outs = []
    for t in range(seq_len):
        ref_o, ref_h = rnn_reference(x_seq[t], ref_h, params)
        ref_outs.append(ref_o)
    ref_out_seq = jnp.stack(ref_outs, axis=0)

    assert out_seq.shape == (seq_len, batch, output_size)
    assert hid.shape == (batch, hidden_size)
    assert jnp.allclose(out_seq, ref_out_seq, atol=1e-4, rtol=1e-4), "seq output mismatch"
    assert jnp.allclose(hid, ref_h, atol=1e-4, rtol=1e-4), "seq hidden mismatch"

    # --- single-step path (exact PyTorch forward signature) -----------------
    out1, hid1 = rnn_forward(x_seq[0], h0, weights,
                             hidden_size=hidden_size, output_size=output_size)
    out1 = jax.block_until_ready(out1)
    hid1 = jax.block_until_ready(hid1)
    ref_out1, ref_hid1 = rnn_reference(x_seq[0], h0, params)
    assert out1.shape == (batch, output_size)
    assert hid1.shape == (batch, hidden_size)
    assert jnp.allclose(out1, ref_out1, atol=1e-4, rtol=1e-4), "step output mismatch"
    assert jnp.allclose(hid1, ref_hid1, atol=1e-4, rtol=1e-4), "step hidden mismatch"

    print("KERNEL_OK")
</pallas_src>

<mosaic_0001>
module attributes {stable_mosaic.version = 11 : i64} {
  func.func @rnn_seq_kernel(%arg0: i32, %arg1: memref<1x8x16xf32, #tpu.memory_space<vmem>>, %arg2: memref<8x128xf32, #tpu.memory_space<vmem>>, %arg3: memref<16x128xf32, #tpu.memory_space<vmem>>, %arg4: memref<128x128xf32, #tpu.memory_space<vmem>>, %arg5: memref<1x128xf32, #tpu.memory_space<vmem>>, %arg6: memref<128x128xf32, #tpu.memory_space<vmem>>, %arg7: memref<1x128xf32, #tpu.memory_space<vmem>>, %arg8: memref<1x8x128xf32, #tpu.memory_space<vmem>>, %arg9: memref<8x128xf32, #tpu.memory_space<vmem>>) attributes {dimension_semantics = [#tpu.dimension_semantics<arbitrary>], iteration_bounds = array<i64: 8>, scalar_prefetch = 0 : i64, scratch_operands = 0 : i64, tpu.core_type = #tpu.core_type<tc>, window_params = [{transform_indices = @transform_0, window_bounds = array<i64: 1, 8, 16>}, {pipeline_mode = #tpu.pipeline_mode<synchronous>, transform_indices = @transform_1, window_bounds = array<i64: 8, 128>}, {pipeline_mode = #tpu.pipeline_mode<synchronous>, transform_indices = @transform_2, window_bounds = array<i64: 16, 128>}, {pipeline_mode = #tpu.pipeline_mode<synchronous>, transform_indices = @transform_3, window_bounds = array<i64: 128, 128>}, {pipeline_mode = #tpu.pipeline_mode<synchronous>, transform_indices = @transform_4, window_bounds = array<i64: 1, 128>}, {pipeline_mode = #tpu.pipeline_mode<synchronous>, transform_indices = @transform_5, window_bounds = array<i64: 128, 128>}, {pipeline_mode = #tpu.pipeline_mode<synchronous>, transform_indices = @transform_6, window_bounds = array<i64: 1, 128>}, {transform_indices = @transform_7, window_bounds = array<i64: 1, 8, 128>}, {pipeline_mode = #tpu.pipeline_mode<synchronous>, transform_indices = @transform_8, window_bounds = array<i64: 8, 128>}]} {
    %c0_i32 = arith.constant 0 : i32
    %0 = arith.cmpi eq, %arg0, %c0_i32 : i32
    %1 = arith.extui %0 : i1 to i32
    %c0_i32_0 = arith.constant 0 : i32
    %2 = arith.cmpi ne, %1, %c0_i32_0 : i32
    scf.if %2 {
      %c0_24 = arith.constant 0 : index
      %c0_25 = arith.constant 0 : index
      %34 = vector.load %arg2[%c0_24, %c0_25] : memref<8x128xf32, #tpu.memory_space<vmem>>, vector<8x128xf32>
      %c0_26 = arith.constant 0 : index
      %c0_27 = arith.constant 0 : index
      %35 = vector.load %arg9[%c0_26, %c0_27] : memref<8x128xf32, #tpu.memory_space<vmem>>, vector<8x128xf32>
      tpu.vector_store %arg9[%c0_26, %c0_27], %34 {strides = array<i32>} : memref<8x128xf32, #tpu.memory_space<vmem>>, vector<8x128xf32>,
    } else {
    }
    %c0 = arith.constant 0 : index
    %c0_1 = arith.constant 0 : index
    %3 = vector.load %arg9[%c0, %c0_1] : memref<8x128xf32, #tpu.memory_space<vmem>>, vector<8x128xf32>
    %c0_2 = arith.constant 0 : index
    %c0_3 = arith.constant 0 : index
    %c0_4 = arith.constant 0 : index
    %4 = vector.load %arg1[%c0_2, %c0_3, %c0_4] : memref<1x8x16xf32, #tpu.memory_space<vmem>>, vector<1x8x16xf32>
    %5 = vector.shape_cast %4 : vector<1x8x16xf32> to vector<8x16xf32>
    %c0_5 = arith.constant 0 : index
    %c0_6 = arith.constant 0 : index
    %6 = vector.load %arg3[%c0_5, %c0_6] : memref<16x128xf32, #tpu.memory_space<vmem>>, vector<16x128xf32>
    %cst = arith.constant dense<0.000000e+00> : vector<8x128xf32>
    %7 = tpu.matmul %5, %6, %cst {dimension_numbers = #tpu.dot_dimension_numbers<[1], [0], [0], [1], [0, 0, 1, 1], [], []>} : vector<8x16xf32>, vector<16x128xf32>, vector<8x128xf32> -> vector<8x128xf32>
    %c0_7 = arith.constant 0 : index
    %c0_8 = arith.constant 0 : index
    %8 = vector.load %arg4[%c0_7, %c0_8] : memref<128x128xf32, #tpu.memory_space<vmem>>, vector<128x128xf32>
    %cst_9 = arith.constant dense<0.000000e+00> : vector<8x128xf32>
    %9 = tpu.matmul %3, %8, %cst_9 {dimension_numbers = #tpu.dot_dimension_numbers<[1], [0], [0], [1], [0, 0, 1, 1], [], []>} : vector<8x128xf32>, vector<128x128xf32>, vector<8x128xf32> -> vector<8x128xf32>
    %10 = arith.addf %7, %9 : vector<8x128xf32>
    %c0_10 = arith.constant 0 : index
    %c0_11 = arith.constant 0 : index
    %11 = vector.load %arg5[%c0_10, %c0_11] : memref<1x128xf32, #tpu.memory_space<vmem>>, vector<1x128xf32>
    %12 = vector.broadcast %11 : vector<1x128xf32> to vector<8x128xf32>
    %13 = arith.addf %10, %12 : vector<8x128xf32>
    %14 = math.tanh %13 : vector<8x128xf32>
    %c0_12 = arith.constant 0 : index
    %c0_13 = arith.constant 0 : index
    %15 = vector.load %arg6[%c0_12, %c0_13] : memref<128x128xf32, #tpu.memory_space<vmem>>, vector<128x128xf32>
    %cst_14 = arith.constant dense<0.000000e+00> : vector<8x128xf32>
    %16 = tpu.matmul %14, %15, %cst_14 {dimension_numbers = #tpu.dot_dimension_numbers<[1], [0], [0], [1], [0, 0, 1, 1], [], []>} : vector<8x128xf32>, vector<128x128xf32>, vector<8x128xf32> -> vector<8x128xf32>
    %c0_15 = arith.constant 0 : index
    %c0_16 = arith.constant 0 : index
    %17 = vector.load %arg7[%c0_15, %c0_16] : memref<1x128xf32, #tpu.memory_space<vmem>>, vector<1x128xf32>
    %18 = vector.broadcast %17 : vector<1x128xf32> to vector<8x128xf32>
    %19 = arith.addf %16, %18 : vector<8x128xf32>
    %cst_17 = arith.constant dense<0xFF800000> : vector<8xf32>
    %20 = vector.multi_reduction <maximumf>, %19, %cst_17 [1] : vector<8x128xf32> to vector<8xf32>
    %21 = vector.shape_cast %20 : vector<8xf32> to vector<8x1xf32>
    %22 = vector.broadcast %21 : vector<8x1xf32> to vector<8x128xf32>
    %23 = arith.subf %19, %22 : vector<8x128xf32>
    %24 = math.exp %23 : vector<8x128xf32>
    %cst_18 = arith.constant dense<0.000000e+00> : vector<8xf32>
    %25 = vector.multi_reduction <add>, %24, %cst_18 [1] : vector<8x128xf32> to vector<8xf32>
    %26 = vector.shape_cast %25 : vector<8xf32> to vector<8x1xf32>
    %27 = math.log %26 : vector<8x1xf32>
    %28 = vector.broadcast %27 : vector<8x1xf32> to vector<8x128xf32>
    %29 = arith.subf %23, %28 : vector<8x128xf32>
    %c0_19 = arith.constant 0 : index
    %c0_20 = arith.constant 0 : index
    %c0_21 = arith.constant 0 : index
    %30 = vector.load %arg8[%c0_19, %c0_20, %c0_21] : memref<1x8x128xf32, #tpu.memory_space<vmem>>, vector<1x8x128xf32>
    %31 = vector.shape_cast %30 : vector<1x8x128xf32> to vector<8x128xf32>
    %32 = vector.shape_cast %29 : vector<8x128xf32> to vector<1x8x128xf32>
    tpu.vector_store %arg8[%c0_19, %c0_20, %c0_21], %32 {strides = array<i32>} : memref<1x8x128xf32, #tpu.memory_space<vmem>>, vector<1x8x128xf32>,
    %c0_22 = arith.constant 0 : index
    %c0_23 = arith.constant 0 : index
    %33 = vector.load %arg9[%c0_22, %c0_23] : memref<8x128xf32, #tpu.memory_space<vmem>>, vector<8x128xf32>
    tpu.vector_store %arg9[%c0_22, %c0_23], %14 {strides = array<i32>} : memref<8x128xf32, #tpu.memory_space<vmem>>, vector<8x128xf32>,
    return
  }
  func.func @transform_0(%arg0: i32) -> (i32, i32, i32) {
    %c0_i32 = arith.constant 0 : i32
    %c0_i32_0 = arith.constant 0 : i32
    %c0_i32_1 = arith.constant 0 : i32
    return %arg0, %c0_i32, %c0_i32_0 : i32, i32, i32
  }
  func.func @transform_1(%arg0: i32) -> (i32, i32) {
    %c0_i32 = arith.constant 0 : i32
    %c0_i32_0 = arith.constant 0 : i32
    %c0_i32_1 = arith.constant 0 : i32
    return %c0_i32, %c0_i32_0 : i32, i32
  }
  func.func @transform_2(%arg0: i32) -> (i32, i32) {
    %c0_i32 = arith.constant 0 : i32
    %c0_i32_0 = arith.constant 0 : i32
    %c0_i32_1 = arith.constant 0 : i32
    return %c0_i32, %c0_i32_0 : i32, i32
  }
  func.func @transform_3(%arg0: i32) -> (i32, i32) {
    %c0_i32 = arith.constant 0 : i32
    %c0_i32_0 = arith.constant 0 : i32
    %c0_i32_1 = arith.constant 0 : i32
    return %c0_i32, %c0_i32_0 : i32, i32
  }
  func.func @transform_4(%arg0: i32) -> (i32, i32) {
    %c0_i32 = arith.constant 0 : i32
    %c0_i32_0 = arith.constant 0 : i32
    %c0_i32_1 = arith.constant 0 : i32
    return %c0_i32, %c0_i32_0 : i32, i32
  }
  func.func @transform_5(%arg0: i32) -> (i32, i32) {
    %c0_i32 = arith.constant 0 : i32
    %c0_i32_0 = arith.constant 0 : i32
    %c0_i32_1 = arith.constant 0 : i32
    return %c0_i32, %c0_i32_0 : i32, i32
  }
  func.func @transform_6(%arg0: i32) -> (i32, i32) {
    %c0_i32 = arith.constant 0 : i32
    %c0_i32_0 = arith.constant 0 : i32
    %c0_i32_1 = arith.constant 0 : i32
    return %c0_i32, %c0_i32_0 : i32, i32
  }
  func.func @transform_7(%arg0: i32) -> (i32, i32, i32) {
    %c0_i32 = arith.constant 0 : i32
    %c0_i32_0 = arith.constant 0 : i32
    %c0_i32_1 = arith.constant 0 : i32
    return %arg0, %c0_i32, %c0_i32_0 : i32, i32, i32
  }
  func.func @transform_8(%arg0: i32) -> (i32, i32) {
    %c0_i32 = arith.constant 0 : i32
    %c0_i32_0 = arith.constant 0 : i32
    %c0_i32_1 = arith.constant 0 : i32
    return %c0_i32, %c0_i32_0 : i32, i32
  }
}

</mosaic_0001>

<bundles_post_ra>
// kernel: rnn_forward_sequence.1
= control target key start
LH: loop header
LB: loop body
LE: loop exit
PB: predicated region body
PF: predicated region fallthrough
CT: control target
= control target key end

     0   :  { %s1136_s0 = inlined_call_operand.hbm [shape: f32[8,8,16], index: 0, kind: input, shape index: {}]   ;;  %s1137_s1 = inlined_call_operand.vmem [shape: f32[8,128], index: 1, kind: input, shape index: {}]   ;;  %s1138_s2 = inlined_call_operand.vmem [shape: f32[16,128], index: 2, kind: input, shape index: {}]   ;;  %s1139_s3 = inlined_call_operand.hbm [shape: f32[128,128], index: 3, kind: input, shape index: {}]   ;;  %s1140_s4 = inlined_call_operand.vmem [shape: f32[1,128], index: 4, kind: input, shape index: {}]   ;;  %s1141_s5 = inlined_call_operand.hbm [shape: f32[128,128], index: 5, kind: input, shape index: {}]   ;;  %s1142_s6 = inlined_call_operand.vmem [shape: f32[1,128], index: 6, kind: input, shape index: {}]   ;;  %s1143_s7 = inlined_call_operand.hbm [shape: f32[8,8,128], index: 7, kind: output, shape index: {0}]   ;;  %s1144_s8 = inlined_call_operand.hbm [shape: f32[8,128], index: 8, kind: output, shape index: {1}]  }
   0x1   :  { %1146 = sst [smem:[#allocation16_spill]] %s1139_s3 }
   0x2   :  { %1147 = sst [smem:[#allocation17_spill]] %s1141_s5 }
   0x3   :  { %14 = vsyncpa [#allocation3], 0 }
   0x4   :  { %16 = vsyncpa [#allocation3 + $0x1], 0 }
   0x5   :  { %17 = vsyncpa [#allocation6], 0 }
   0x6   :  { %18 = vsyncpa [#allocation4], 0 }
   0x7   :  { %20 = vsyncpa [#allocation4 + $0x1], 0 }
   0x8   :  { %21 = vsyncpa [#allocation10], 0  ;;  %s960_s27 = smov 0   ;;  %s962_s28 = smov 0  }
   0x9   :  { %s964_s29 = smov 0   ;;  %s966_s30 = smov 0  }
   0xa LB: > { %s1148_s3 = sld [smem:[#allocation16_spill]]  ;;  %s984_s12 = sadd.s32 4294967295, %s908_s30   ;;  %s908_s30 = sphi %s966_s30, %s1165_s30   ;;  %s904_s29 = sphi %s964_s29, %s1164_s29   ;;  %s900_s28 = sphi %s962_s28, %s1163_s28   ;;  %s896_s27 = sphi %s960_s27, %s1162_s27  }
   0xb   : > { %p613_p0 = scmp.ge.s32.totalorder %s908_s30, 1  ;;  %p48_p1 = scmp.eq.s32.totalorder %s984_s12, 0 }
   0xc   : > { %p231_p2 = scmp.lt.s32.totalorder %s908_s30, 9  ;;  %s910_s14 = smov [#allocation5]  }
   0xd   : > { %s250_s15 = sshll.u32 %s910_s14, 4  ;;  %s1150_s5 = sld [smem:[#allocation17_spill]]  ;;  %s251_s15 = int_to_ptr.vmem [resolvable:$true] %s250_s15 }
   0xe   : > { %p990_p4 = pnand %p613_p0, %p231_p2  ;;  %s911_s19 = smov [#allocation7]  }
   0xf   : > { %s267_s20 = sshll.u32 %s911_s19, 4  ;;  %s912_s21 = smov 128   ;;  %s268_s20 = int_to_ptr.vmem [resolvable:$true] %s267_s20 }
  0x10   : > { %s248_s11 = sshll.u32 %s1148_s3, 4  ;;  %p648_p5 = pneg %p990_p4  ;;  %s249_s11 = int_to_ptr.hbm [resolvable:$true] %s248_s11 }
  0x11   : > { %s913_s22 = smov 8   ;;  %s612_s23 = sadd.s32 4294967294, %s908_s30  }
  0x12   : > { %p649_p6 = pnand %p648_p5, %p48_p1  ;;  %s1003_s24 = sadd.s32 1, %s908_s30  }
  0x13   : > { %s265_s18 = sshll.u32 %s1150_s5, 4  ;;  %s31_s25 = ssub.s32 %s908_s30, %s1003_s24  ;;  %s266_s18 = int_to_ptr.hbm [resolvable:$true] %s265_s18 }
  0x14   : > { %651 = dma.hbm_to_vmem [thread:$0]  (!%p649_p6), %s249_s11, 2048, %s251_s15, [#allocation6], %s912_s21, %s912_s21, %s913_s22  }
  0x15   : > { %654 = dma.hbm_to_vmem [thread:$0]  (!%p649_p6), %s266_s18, 2048, %s268_s20, [#allocation6], %s912_s21, %s912_s21, %s913_s22  }
  0x16   : > { %s34_s26 = sadd.s32 1, %s904_s29  ;;  %p32_p7 = scmp.eq.s32.totalorder %s31_s25, 0 }
  0x17   : > { %p41_p8 = scmp.ne.s32.totalorder %s904_s29, %s900_s28  ;;  %p42_p9 = scmp.eq.s32.totalorder %s908_s30, 0 }
  0x18   : > { %p47_p10 = scmp.ne.s32.totalorder %s900_s28, %s896_s27  ;;  %p1145_p13 = scmp.eq.s32.totalorder %s984_s12, 7 }
  0x19   : > { %s1014_s9 = scalar_select %p32_p7, %s904_s29, %s34_s26  }
  0x1a   : > { %p1016_p11 = por %p42_p9, %p41_p8  ;;  %p1022_p12 = por %p48_p1, %p47_p10 }
  0x1b   : > { %1151 = sst [smem:[#allocation15_spill]] %s1014_s9  ;;  %p203_p0 = scmp.eq.s32.totalorder %s612_s23, 7 }
  0x1c   : > { %p665_p2 = scmp.lt.s32.totalorder %s908_s30, 8  ;;  %s284_s14 = sand.u32 1, %s904_s29  }
  0x1d   : > { %p1031_p5 = por %p1145_p13, %p41_p8  ;;  %p1035_p6 = por %p203_p0, %p47_p10 }
  0x1e   : > { %s617_s17 = sshll.u32 %s284_s14, 3  ;;  %s618_s18 = sshll.u32 %s908_s30, 3 }
  0x1f   : > { %s292_s21 = scalar_lea.hbm %s1136_s0, %s618_s18  ;;  %s288_s22 = scalar_lea.vmem [#allocation2], %s617_s17 }
  0x20   : > { %s296_s25 = sshll.u32 %s288_s22, 4  ;;  %s294_s23 = sshll.u32 %s292_s21, 4  ;;  %s297_s25 = int_to_ptr.vmem [resolvable:$true] %s296_s25  ;;  %s295_s23 = int_to_ptr.hbm [resolvable:$true] %s294_s23 }
  0x21   : > { %p1045_p7 = pnand %p665_p2, %p1016_p11  ;;  %s285_s3 = scalar_lea.sflag [#allocation3], %s284_s14 }
  0x22   : > { %s776_s5 = sshra.s32 %s295_s23, 4  ;;  %s783_s19 = scalar_lea.hbm %s1136_s0, 64  ;;  %s777_s5 = int_to_ptr.hbm [resolvable:$true] %s776_s5 }
  0x23   : > { %s778_s9 = scalar_lea.hbm %s777_s5, 8  ;;  %p780_p9 = pneg %p1045_p7 }
  0x24   : > { %p779_p8 = scmp.ne.s32.totalorder %s777_s5, %s778_s9  ;;  %p784_p11 = scmp.lt.s32.totalorder %s777_s5, %s1136_s0 }
  0x25   : > { %p785_p2 = scmp.lt.s32.totalorder %s783_s19, %s778_s9 }
  0x26   : > { %p781_p10 = pnand %p780_p9, %p779_p8 }
  0x27   : > { %p786_p13 = por %p785_p2, %p784_p11 }
  0x28   : > { %p782_p0 = pneg %p781_p10 }
  0x2a   : > { %p787_p3 = pnand %p786_p13, %p782_p0 }
  0x2c   : > { %790 = shalt.err (!%p787_p3)
}
  0x2d   : > { %658 = dma.hbm_to_vmem [thread:$0]  (!%p1045_p7), %s295_s23, 128, %s297_s25, %s285_s3  }
  0x2e   : > { %305 = sbr.rel (%p990_p4) target bundleno = 628 (0x274), region = 48  ;;  %s1062_s14 = sand.u32 (!%p990_p4), 1, %s900_s28  }
  0x2f   : > { %s620_s21 = sshll.u32 (!%p990_p4), %s1062_s14, 3  ;;  %s308_s22 = scalar_lea.sflag (!%p990_p4), [#allocation3], %s1062_s14 }
  0x30   : > { %s311_s17 = scalar_lea.vmem (!%p990_p4), [#allocation2], %s620_s21 }
  0x33   : > { %879 = dma.done.wait (%p1022_p12), %s308_s22, 128  }
  0x34   : > { %881 = vsyncadd (%p1022_p12), %s308_s22, 4294967168 }
  0x35   : > { %883 = dma.done.wait (%p48_p1), [#allocation6], 4096  }
  0x36   : > { %885 = vsyncadd (%p48_p1), [#allocation6], 4294963200  ;;  %s1074_s3 = scalar_lea.vmem [#allocation8], %s620_s21  ;;  %p1157_p3 = scmp.ne.s32.totalorder %s984_s12, 0 }
  0x38   : > { %358 = sbr.rel (%p1157_p3) target bundleno = 63 (0x3f), region = 64 }
  0x3d   : > { %v359_v0 = vld [vmem:[%s1137_s1] sm:$0xff] }
  0x3e   : > { %360 = vst [vmem:[#allocation9] sm:$0xff] %v359_v0 }
  0x3f PF: > { %v380_v1 = vld [vmem:[#allocation5 + $0x78] sm:$0xff]  ;;  %v379_v2 = vld [vmem:[#allocation5 + $0x70] sm:$0xff]  ;;  %v378_v3 = vld [vmem:[#allocation5 + $0x68] sm:$0xff]  ;;  %vm401_vm0 = vcmask 130048   ;;  %s914_s10 = smov [#allocation9]   ;;  %s510_s5 = sshll.u32 %s1144_s8, 4  ;;  %s511_s5 = int_to_ptr.hbm [resolvable:$true] %s510_s5 }
  0x40   : > { %381 = vmatpush.msra.mxu0 %v380_v1  ;;  %v377_v4 = vld [vmem:[#allocation5 + $0x60] sm:$0xff]  ;;  %v364_v5 = vld [vmem:[%s1138_s2 + $0x8] sm:$0xff]  ;;  %v363_v6 = vld [vmem:[%s1138_s2] sm:$0xff]  ;;  %s508_s21 = sshll.u32 %s914_s10, 4  ;;  %p1158_p1 = scmp.eq.s32.totalorder %s984_s12, 7  ;;  %s509_s21 = int_to_ptr.vmem [resolvable:$true] %s508_s21 }
  0x41   : > { %v376_v7 = vld [vmem:[#allocation5 + $0x58] sm:$0xff]  ;;  %419 = vmatpush.msra.mxu1 %v364_v5  ;;  %v445_v10 = vld [vmem:[#allocation7 + $0x70] sm:$0xff]  ;;  %v444_v12 = vld [vmem:[#allocation7 + $0x68] sm:$0xff]  ;;  %s627_s13 = sshll.u32 %s984_s12, 3  ;;  %s496_s23 = sshll.u32 %s1074_s3, 4  ;;  %s497_s23 = int_to_ptr.vmem [resolvable:$true] %s496_s23 }
  0x42   : > { %382 = vmatpush.msra.mxu0 %v379_v2  ;;  %v362_v8 = vld [vmem:[%s311_s17] sm:$0xff]  ;;  %v374_v13 = vld [vmem:[#allocation5 + $0x48] sm:$0xff]  ;;  %v443_v14 = vld [vmem:[#allocation7 + $0x60] sm:$0xff]  ;;  %s494_s25 = scalar_lea.hbm %s1143_s7, %s627_s13  ;;  %s484_s18 = scalar_lea.sflag [#allocation4], %s1062_s14 }
  0x43   : > { %v446_v9 = vld [vmem:[#allocation7 + $0x78] sm:$0xff]  ;;  %v375_v11 = vld [vmem:[#allocation5 + $0x50] sm:$0xff]  ;;  %420 = vmatpush.msra.mxu1 %v363_v6  ;;  %v373_v15 = vld [vmem:[#allocation5 + $0x40] sm:$0xff]  ;;  %s498_s26 = sshll.u32 %s494_s25, 4  ;;  %s854_s22 = scalar_lea.hbm %s1143_s7, 64  ;;  %s499_s26 = int_to_ptr.hbm [resolvable:$true] %s498_s26 }
  0x44   : > { %383 = vmatpush.msra.mxu0 %v378_v3  ;;  %451 = vmatpush.msra.mxu2 %v446_v9  ;;  %v442_v16 = vld [vmem:[#allocation7 + $0x58] sm:$0xff]  ;;  %v441_v18 = vld [vmem:[#allocation7 + $0x50] sm:$0xff]  ;;  %v440_v20 = vld [vmem:[#allocation7 + $0x48] sm:$0xff]  ;;  %s848_s19 = sshra.s32 %s499_s26, 4  ;;  %s849_s19 = int_to_ptr.hbm [resolvable:$true] %s848_s19 }
  0x45   : > { %625 = vmatmul.msk.f32.vlgmr.msra.gmra.mxu1 %vm401_vm0, %v362_v8  ;;  %v372_v17 = vld [vmem:[#allocation5 + $0x38] sm:$0xff]  ;;  %v371_v19 = vld [vmem:[#allocation5 + $0x30] sm:$0xff]  ;;  %v370_v21 = vld [vmem:[#allocation5 + $0x28] sm:$0xff]  ;;  %s850_s20 = scalar_lea.hbm %s849_s19, 8  ;;  %p855_p7 = scmp.lt.s32.totalorder %s849_s19, %s1143_s7 }
  0x46   : > { %384 = vmatpush.msra.mxu0 %v377_v4  ;;  %452 = vmatpush.msra.mxu2 %v445_v10  ;;  %v439_v22 = vld [vmem:[#allocation7 + $0x40] sm:$0xff]  ;;  %v438_v24 = vld [vmem:[#allocation7 + $0x38] sm:$0xff]  ;;  %v437_v26 = vld [vmem:[#allocation7 + $0x30] sm:$0xff]  ;;  %p851_p4 = scmp.ne.s32.totalorder %s849_s19, %s850_s20  ;;  %p856_p8 = scmp.lt.s32.totalorder %s854_s22, %s850_s20 }
  0x47   : > { %v369_v23 = vld [vmem:[#allocation5 + $0x20] sm:$0xff]  ;;  %v368_v25 = vld [vmem:[#allocation5 + $0x18] sm:$0xff]  ;;  %v367_v27 = vld [vmem:[#allocation5 + $0x10] sm:$0xff] }
  0x48   : > { %385 = vmatpush.msra.mxu0 %v376_v7  ;;  %453 = vmatpush.msra.mxu2 %v444_v12  ;;  %v366_v28 = vld [vmem:[#allocation5 + $0x8] sm:$0xff]  ;;  %v365_v29 = vld [vmem:[#allocation5] sm:$0xff]  ;;  %v361_v30 = vld [vmem:[#allocation9] sm:$0xff]  ;;  %p852_p12 = pnand %p851_p4, %p1031_p5  ;;  %p857_p9 = por %p856_p8, %p855_p7 }
  0x49   : > { %v436_v31 = vld [vmem:[#allocation7 + $0x28] sm:$0xff]  ;;  %v435_v32 = vld [vmem:[#allocation7 + $0x20] sm:$0xff]  ;;  %v434_v33 = vld [vmem:[#allocation7 + $0x18] sm:$0xff] }
  0x4a   : > { %386 = vmatpush.msra.mxu0 %v375_v11  ;;  %454 = vmatpush.msra.mxu2 %v443_v14  ;;  %v433_v34 = vld [vmem:[#allocation7 + $0x10] sm:$0xff]  ;;  %v432_v35 = vld [vmem:[#allocation7 + $0x8] sm:$0xff]  ;;  %v431_v36 = vld [vmem:[#allocation7] sm:$0xff]  ;;  %p853_p13 = pneg %p852_p12 }
  0x4b   : > { %v708_v38 = vld [vmem:[%s1140_s4] ss:$0 sm:$0xff] }
  0x4c   : > { %387 = vmatpush.msra.mxu0 %v374_v13  ;;  %455 = vmatpush.msra.mxu2 %v442_v16  ;;  %v709_v43 = vld [vmem:[%s1142_s6] ss:$0 sm:$0xff]  ;;  %p858_p10 = pnand %p857_p9, %p853_p13 }
  0x4e   : > { %388 = vmatpush.msra.mxu0 %v373_v15  ;;  %456 = vmatpush.msra.mxu2 %v441_v18 }
  0x50   : > { %389 = vmatpush.msra.mxu0 %v372_v17  ;;  %457 = vmatpush.msra.mxu2 %v440_v20 }
  0x52   : > { %390 = vmatpush.msra.mxu0 %v371_v19  ;;  %458 = vmatpush.msra.mxu2 %v439_v22 }
  0x54   : > { %391 = vmatpush.msra.mxu0 %v370_v21  ;;  %459 = vmatpush.msra.mxu2 %v438_v24 }
  0x56   : > { %392 = vmatpush.msra.mxu0 %v369_v23  ;;  %460 = vmatpush.msra.mxu2 %v437_v26 }
  0x58   : > { %393 = vmatpush.msra.mxu0 %v368_v25  ;;  %461 = vmatpush.msra.mxu2 %v436_v31 }
  0x5a   : > { %394 = vmatpush.msra.mxu0 %v367_v27  ;;  %462 = vmatpush.msra.mxu2 %v435_v32 }
  0x5c   : > { %395 = vmatpush.msra.mxu0 %v366_v28  ;;  %463 = vmatpush.msra.mxu2 %v434_v33 }
  0x5e   : > { %396 = vmatpush.msra.mxu0 %v365_v29  ;;  %464 = vmatpush.msra.mxu2 %v433_v34 }
  0x5f   : > { %397 = vmatmul.f32.vlgmr.msra.gmra.mxu0 %v361_v30 }
  0x60   : > { %465 = vmatpush.msra.mxu2 %v432_v35 }
  0x62   : > { %466 = vmatpush.msra.mxu2 %v431_v36 }
  0xc2   : > { %v422_v37 = vpop.f32.mrf.mxu1 }
  0xdc   : > { %v398_v39 = vpop.f32.mrf.mxu0 }
  0xdd   : > { %v423_v40 = vadd.f32 %v422_v37, %v398_v39 }
  0xdf   : > { %v429_v41 = vadd.f32 %v708_v38, %v423_v40 }
  0xe1   : > { %710 = vtanh.f32 %v429_v41 }
  0xe7   : > { %v711_v42 = vpop.eup %710 }
  0xe8   : > { %482 = vst [vmem:[#allocation9] sm:$0xff] %v711_v42  ;;  %467 = vmatmul.f32.vlgmr.msra.gmra.mxu2 %v711_v42 }
  0xe9   : > { %644 = dma.vmem_to_hbm [thread:$0]  (%p1158_p1), %s509_s21, 128, %s511_s5, [#allocation10]  }
 0x16b   : > { %v468_v44 = vpop.f32.mrf.mxu2 }
 0x16c   : > { %v469_v45 = vadd.f32 %v709_v43, %v468_v44 }
 0x16e   : > { %471 = vmax.xlane.f32.xlu0 %v469_v45 }
 0x1e1   : > { %v472_v46 = vpop.xlane.xlu0 %471 }
 0x1e2   : > { %v473_v47 = vsub.f32 %v469_v45, %v472_v46 }
 0x1e4   : > { %v474_v48 = vmul.f32 1.442695, %v473_v47 }
 0x1e6   : > { %712 = vpow2.f32 %v474_v48 }
 0x1ec   : > { %v713_v49 = vpop.eup %712 }
 0x1ed   : > { %476 = vadd.xlane.f32.xlu0 %v713_v49 }
 0x260   : > { %v477_v50 = vpop.xlane.xlu0 %476 }
 0x261   : > { %714 = vlog2.f32 %v477_v50 }
 0x267   : > { %v715_v51 = vpop.eup %714 }
 0x268   : > { %v479_v52 = vmul.f32 0.6931472, %v715_v51 }
 0x26a   : > { %v480_v53 = vsub.f32 %v473_v47, %v479_v52 }
 0x26c   : > { %481 = vst [vmem:[%s1074_s3] sm:$0xff] %v480_v53 }
 0x26d   : > { %861 = shalt.err (!%p858_p10)
}
 0x26e   : > { %642 = dma.vmem_to_hbm [thread:$0]  (%p1031_p5), %s497_s23, 128, %s499_s26, %s484_s18  }
 0x26f   : > { %p1159_p0 = pmov %p1158_p1 }
 0x271   : > { %887 = dma.done.wait (%p1159_p0), [#allocation10], 128   ;;  %p1160_p11 = pmov %p1159_p0 }
 0x273   : > { %889 = vsyncadd (%p1160_p11), [#allocation10], 4294967168 }
 0x274 PF: > { %p670_p2 = scmp.ge.s32.totalorder %s908_s30, 2  ;;  %s527_s14 = sand.u32 1, %s896_s27  }
 0x275   : > { %s528_s3 = scalar_lea.sflag [#allocation4], %s527_s14 }
 0x276   : > { %p660_p3 = pnand %p670_p2, %p1035_p6 }
 0x278   : > { %p661_p1 = pneg %p660_p3 }
 0x27a   : > { %891 = dma.done.wait (%p661_p1), %s528_s3, 128  }
 0x27b   : > { %893 = vsyncadd (%p661_p1), %s528_s3, 4294967168  ;;  %s1161_s15 = sld [smem:[#allocation15_spill]]  ;;  %p24_p5 = scmp.ge.s32.totalorder %s1003_s24, 10  }
 0x27c   : > { %s1162_s27 = smov %s900_s28  ;;  %s1163_s28 = smov %s904_s29 }
 0x27d   : > { %s1165_s30 = smov %s1003_s24  ;;  %26 = sbr.rel (!%p24_p5) target bundleno = 10 (0xa), region = 113 }
 0x281   : > { %s1164_s29 = smov %s1161_s15 }
 0x282   :  { %534 = vsyncpa [#allocation3], 1 }
 0x283   :  { %536 = vsyncpa [#allocation3 + $0x1], 1 }
 0x284   :  { %537 = vsyncpa [#allocation6], 1 }
 0x285   :  { %538 = vsyncpa [#allocation4], 1 }
 0x286   :  { %540 = vsyncpa [#allocation4 + $0x1], 1 }
 0x287   :  { %541 = vsyncpa [#allocation10], 1 }

</bundles_post_ra>
